<compile_context>
chip_gen: v5e
topology: v5e:2x2
jax: 0.10.0
libtpu: 0.0.40
codegen_flags: <defaults>
</compile_context>

<pallas_src>
import jax
import jax.numpy as jnp
from jax.experimental import pallas as pl
from jax.experimental.pallas import tpu as pltpu


def _zero_kernel(x_hbm_ref, o_ref):
    # x_hbm_ref is a raw HBM ref (pl.ANY); it is intentionally never read, so
    # no DMA traffic is generated for the (ignored) input.
    del x_hbm_ref
    o_ref[0] = jnp.int32(0)


def zero_forward(x):
    """Reproduces Zero.forward: returns 0 regardless of input.

    x: any-rank array (e.g. NCHW image batch). Output: 0-d int32 array == 0.
    """
    out = pl.pallas_call(
        _zero_kernel,
        out_shape=jax.ShapeDtypeStruct((1,), jnp.int32),
        in_specs=[pl.BlockSpec(memory_space=pl.ANY)],       # no input DMA
        out_specs=pl.BlockSpec(memory_space=pltpu.MemorySpace.SMEM),
    )(x)
    # PyTorch forward returns a scalar 0; squeeze the 1-element SMEM output.
    return out[0]


if __name__ == "__main__":
    key = jax.random.PRNGKey(0)
    # Small NCHW input consistent with a generative-model image batch.
    x = jax.random.normal(key, (2, 4, 16, 16), dtype=jnp.float32)

    out = zero_forward(x)
    out = jax.block_until_ready(out)

    assert out.shape == (), f"expected scalar, got shape {out.shape}"
    assert int(out) == 0, f"expected 0, got {int(out)}"
    print("KERNEL_OK")
</pallas_src>

<mosaic_0001>
module attributes {stable_mosaic.version = 11 : i64} {
  func.func @_zero_kernel(%arg0: memref<2x4x16x16xf32, #tpu.memory_space<any>>, %arg1: memref<1xi32, #tpu.memory_space<smem>>) attributes {dimension_semantics = [], scalar_prefetch = 0 : i64, scratch_operands = 0 : i64, tpu.core_type = #tpu.core_type<tc>} {
    %c0_i32 = arith.constant 0 : i32
    %c0 = arith.constant 0 : index
    %0 = memref.load %arg1[%c0] : memref<1xi32, #tpu.memory_space<smem>>
    memref.store %c0_i32, %arg1[%c0] : memref<1xi32, #tpu.memory_space<smem>>
    return
  }
}

</mosaic_0001>

<bundles_post_ra>
// kernel: tpu_custom_call.1
= control target key start
LH: loop header
LB: loop body
LE: loop exit
PB: predicated region body
PF: predicated region fallthrough
CT: control target
= control target key end

     0   :  { %6 = vsyncpa [#allocation3], 0  ;;  %s40_s9 = smov 0   ;;  %s41_s10 = smov [#allocation2]   ;;  %s55_s0 = inlined_call_operand.hbm [shape: f32[2,4,16,16], index: 0, kind: input, shape index: {}]   ;;  %s56_s1 = inlined_call_operand.hbm [shape: s32[1], index: 1, kind: output, shape index: {}]  }
   0x1   :  { %s14_s8 = sshll.u32 %s56_s1, 4  ;;  %8 = sst [smem:[#allocation2]] %s40_s9  ;;  %s15_s8 = int_to_ptr.hbm [resolvable:$true] %s14_s8 }
   0x2   :  { %17 = dma.smem_to_hbm %s41_s10, 16, %s15_s8, [#allocation3]  }
   0x3   :  { %38 = dma.done.wait [#allocation3], 16  }
   0x4   :  { %39 = vsyncadd [#allocation3], 4294967280 }
   0x5   :  { %22 = sfence }
   0x6   :  { %23 = vsyncpa [#allocation3], 1 }

</bundles_post_ra>
